<compile_context>
chip_gen: v6e
topology: v6e:2x2x1
jax: 0.10.0
libtpu: 0.0.40
codegen_flags: <defaults>
</compile_context>

<pallas_src>
import math

import jax
import jax.numpy as jnp
from jax.experimental import pallas as pl
from jax.experimental.pallas import tpu as pltpu

_HALF_LOG_2PI = 0.5 * math.log(2.0 * math.pi)
_TARGET_BLOCK_BYTES = 2 * 1024 * 1024  # ~2 MiB of VMEM per input block


def _tile_rows(n_rows: int, lanes: int, bytes_per_elem: int = 4) -> int:
    """Batch-tile size targeting ~2 MiB of (lane-padded) VMEM per block.

    Rows are counted against the lane-padded width (multiples of 128) so the
    double-buffered footprint stays well inside every generation's scoped
    VMEM default.  Returned tile is either the full row count (exempt from
    the /8 rule) or a multiple of 8.
    """
    row_bytes = ((lanes + 127) // 128) * 128 * bytes_per_elem
    if n_rows * row_bytes <= _TARGET_BLOCK_BYTES:
        return n_rows
    t = max(8, (_TARGET_BLOCK_BYTES // row_bytes) // 8 * 8)
    return min(int(t), n_rows)


# -----------------------------------------------------------------------------
# Kernels
# -----------------------------------------------------------------------------
def _make_logprob_kernel(M, rep, log_norm, standard):
    """Per-tile log-density over a lane-packed (TB, rep*M) block.

    Packed row r holds `rep` consecutive latent vectors (lanes [g*M:(g+1)*M]
    <-> sample r*rep + g; a free row-major reshape of (B, M)), so the input
    DMA and the VPU work are lane-dense.  The per-sample reduction is `rep`
    static M-lane segment sums (exact f32), and the data-independent
    normalizer `log_norm` is fused into the store.
    """
    def finish(t):
        sq = t * t
        parts = [jnp.sum(sq[:, g * M:(g + 1) * M], axis=-1, keepdims=True)
                 for g in range(rep)]
        s = parts[0] if rep == 1 else jnp.concatenate(parts, axis=-1)
        return log_norm - 0.5 * s

    if standard:
        # mean=0, std=1: no operands beyond z, no subtract/multiply.
        def kernel(zp_ref, out_ref):
            out_ref[...] = finish(zp_ref[...])
    else:
        def kernel(zp_ref, mean_ref, istd_ref, out_ref):
            t = (zp_ref[...] - mean_ref[...]) * istd_ref[...]
            out_ref[...] = finish(t)
    return kernel


def _affine_kernel(eps_ref, mean_ref, std_ref, out_ref):
    # eps/out: (TB, L) lane-packed; mean/std: (1, L) tiled rep x along lanes
    # (VMEM-resident across the whole grid).
    out_ref[...] = mean_ref[...] + std_ref[...] * eps_ref[...]


# -----------------------------------------------------------------------------
# Distribution object (stand-in for td.Independent(td.Normal(mean, std), 1))
# -----------------------------------------------------------------------------
class _IndependentNormal:
    def __init__(self, mean, std):
        mean = jnp.asarray(mean, dtype=jnp.float32).reshape(-1)
        std = jnp.asarray(std, dtype=jnp.float32).reshape(-1)
        self.M = int(mean.shape[0])
        self.mean = mean
        self.std = std

        # Module constants (nn.Parameter with requires_grad=False), so it is
        # safe to pull them back to Python at construction time.
        self._standard = bool(jnp.all(mean == 0.0)) and bool(jnp.all(std == 1.0))
        self._log_norm = float(jnp.sum(-jnp.log(std))) - self.M * _HALF_LOG_2PI

        # Lane packing: (B, M) <-> (B/rep, rep*M) is a free row-major reshape;
        # choose rep so the packed row is exactly 128 lanes when possible.
        self._rep = 128 // self.M if (self.M <= 128 and 128 % self.M == 0) else 1

        # Small resident row constants for both the packed and unpacked widths.
        self._consts = {}
        for rep in {1, self._rep}:
            L = self.M * rep
            self._consts[rep] = dict(
                L=L,
                mean=jnp.tile(mean, rep).reshape(1, L),
                std=jnp.tile(std, rep).reshape(1, L),
                istd=jnp.tile(1.0 / std, rep).reshape(1, L),
            )

    # ---- log_prob -----------------------------------------------------------
    def log_prob(self, z):
        z = jnp.asarray(z, dtype=jnp.float32)
        squeeze = z.ndim == 1
        if squeeze:
            z = z[None, :]
        B, M = z.shape
        assert M == self.M, (M, self.M)

        # Fall back to the unpacked width only when B is not a multiple of rep.
        rep = self._rep if (B % self._rep == 0) else 1
        c = self._consts[rep]
        L = c["L"]
        R = B // rep
        zp = z.reshape(R, L)                     # free (row-major)

        TB = _tile_rows(R, L)
        grid = (pl.cdiv(R, TB),)
        kernel = _make_logprob_kernel(M, rep, self._log_norm, self._standard)

        if self._standard:
            in_specs = [pl.BlockSpec((TB, L), lambda i: (i, 0))]
            args = (zp,)
        else:
            in_specs = [
                pl.BlockSpec((TB, L), lambda i: (i, 0)),
                pl.BlockSpec((1, L), lambda i: (0, 0)),   # VMEM-resident
                pl.BlockSpec((1, L), lambda i: (0, 0)),   # VMEM-resident
            ]
            args = (zp, c["mean"], c["istd"])

        out = pl.pallas_call(
            kernel,
            out_shape=jax.ShapeDtypeStruct((R, rep), jnp.float32),
            grid_spec=pltpu.PrefetchScalarGridSpec(
                num_scalar_prefetch=0,
                grid=grid,
                in_specs=in_specs,
                out_specs=pl.BlockSpec((TB, rep), lambda i: (i, 0)),
            ),
            compiler_params=pltpu.CompilerParams(
                dimension_semantics=("parallel",)),
        )(*args)

        lp = out.reshape(B)                      # free (row-major)
        return lp[0] if squeeze else lp

    # ---- sample (reparameterized) -------------------------------------------
    def sample(self, key, sample_shape=()):
        # eps is generated outside the kernel with jax.random (grid-invariant:
        # the drawn samples never depend on the Pallas tile size).
        # TODO(synk): on real TPU an in-kernel pltpu.prng_seed/stateful_normal
        # path would avoid reading eps from HBM, but those primitives have no
        # interpret/CPU lowering, so the portable path is used here.
        shape = tuple(sample_shape)
        eps = jax.random.normal(key, shape + (self.M,), dtype=jnp.float32)
        if self._standard:
            # mean=0, std=1: the affine transform is the identity; running a
            # kernel here would just add a full read+write pass over HBM.
            return eps
        return self._affine(eps)

    rsample = sample

    def _affine(self, eps):
        final_shape = eps.shape
        flat = eps.reshape(-1, self.M)
        B = flat.shape[0]
        rep = self._rep if (B % self._rep == 0) else 1
        c = self._consts[rep]
        L = c["L"]
        R = B // rep
        ep = flat.reshape(R, L)                  # free (row-major)

        TB = _tile_rows(R, L)
        out = pl.pallas_call(
            _affine_kernel,
            out_shape=jax.ShapeDtypeStruct((R, L), jnp.float32),
            grid_spec=pltpu.PrefetchScalarGridSpec(
                num_scalar_prefetch=0,
                grid=(pl.cdiv(R, TB),),
                in_specs=[
                    pl.BlockSpec((TB, L), lambda i: (i, 0)),
                    pl.BlockSpec((1, L), lambda i: (0, 0)),   # VMEM-resident
                    pl.BlockSpec((1, L), lambda i: (0, 0)),   # VMEM-resident
                ],
                out_specs=pl.BlockSpec((TB, L), lambda i: (i, 0)),
            ),
            compiler_params=pltpu.CompilerParams(
                dimension_semantics=("parallel",)),
        )(ep, c["mean"], c["std"])
        return out.reshape(final_shape)


class GaussianPrior:
    """JAX/Pallas port of the PyTorch GaussianPrior module."""

    def __init__(self, M: int):
        self.M = M
        # nn.Parameter(..., requires_grad=False) -> plain constant buffers.
        self.mean = jnp.zeros((M,), dtype=jnp.float32)
        self.std = jnp.ones((M,), dtype=jnp.float32)
        self._dist = _IndependentNormal(self.mean, self.std)

    def forward(self):
        """Return the prior distribution (Pallas-backed log_prob / sample)."""
        return self._dist

    __call__ = forward


# -----------------------------------------------------------------------------
# Pure-JAX reference for td.Independent(td.Normal(mean, std), 1).log_prob
# -----------------------------------------------------------------------------
def _ref_logprob(z, mean, std):
    var = std * std
    ld = -((z - mean) ** 2) / (2.0 * var) - jnp.log(std) - _HALF_LOG_2PI
    return jnp.sum(ld, axis=-1)


if __name__ == "__main__":
    M = 32   # latent dimension
    B = 64   # batch of latent samples

    prior_module = GaussianPrior(M)
    prior = prior_module()  # forward(): returns the distribution

    key = jax.random.PRNGKey(0)
    k_z, k_s, k_s2 = jax.random.split(key, 3)
    z = jax.random.normal(k_z, (B, M), dtype=jnp.float32)

    # --- standard prior: Pallas log_prob vs. pure-JAX reference --------------
    lp = prior.log_prob(z)
    jax.block_until_ready(lp)
    lp_ref = _ref_logprob(z, prior_module.mean, prior_module.std)
    assert lp.shape == (B,)
    assert jnp.allclose(lp, lp_ref, atol=1e-4, rtol=1e-4)

    # --- standard prior: sampling (shape, finiteness, loose moments) ---------
    samp = prior.sample(k_s, (B,))
    jax.block_until_ready(samp)
    assert samp.shape == (B, M)
    assert bool(jnp.all(jnp.isfinite(samp)))
    assert abs(float(jnp.mean(samp))) < 0.25
    assert abs(float(jnp.std(samp)) - 1.0) < 0.25

    # --- general mean/std: exercises the non-specialized Pallas kernels ------
    mean_g = jnp.linspace(-1.0, 1.0, M, dtype=jnp.float32)
    std_g = jnp.linspace(0.5, 1.5, M, dtype=jnp.float32)
    dist_g = _IndependentNormal(mean_g, std_g)

    lp_g = dist_g.log_prob(z)
    jax.block_until_ready(lp_g)
    lp_g_ref = _ref_logprob(z, mean_g, std_g)
    assert jnp.allclose(lp_g, lp_g_ref, atol=1e-3, rtol=1e-4)

    samp_g = dist_g.sample(k_s2, (B,))
    jax.block_until_ready(samp_g)
    eps_ref = jax.random.normal(k_s2, (B, M), dtype=jnp.float32)
    assert samp_g.shape == (B, M)
    assert jnp.allclose(samp_g, mean_g + std_g * eps_ref, atol=1e-5, rtol=1e-5)

    print("KERNEL_OK")
</pallas_src>

<mosaic_0001>
module attributes {stable_mosaic.version = 11 : i64} {
  func.func @kernel(%arg0: i32, %arg1: memref<16x128xf32, #tpu.memory_space<vmem>>, %arg2: memref<16x4xf32, #tpu.memory_space<vmem>>) attributes {dimension_semantics = [#tpu.dimension_semantics<parallel>], iteration_bounds = array<i64: 1>, scalar_prefetch = 0 : i64, scratch_operands = 0 : i64, tpu.core_type = #tpu.core_type<tc>, window_params = [{transform_indices = @transform_0, window_bounds = array<i64: 16, 128>}, {transform_indices = @transform_1, window_bounds = array<i64: 16, 4>}]} {
    %c0 = arith.constant 0 : index
    %c0_0 = arith.constant 0 : index
    %0 = vector.load %arg1[%c0, %c0_0] : memref<16x128xf32, #tpu.memory_space<vmem>>, vector<16x128xf32>
    %1 = arith.mulf %0, %0 : vector<16x128xf32>
    %2 = vector.extract_strided_slice %1 {offsets = [0, 0], sizes = [16, 32], strides = [1, 1]} : vector<16x128xf32> to vector<16x32xf32>
    %cst = arith.constant dense<0.000000e+00> : vector<16xf32>
    %3 = vector.multi_reduction <add>, %2, %cst [1] : vector<16x32xf32> to vector<16xf32>
    %4 = vector.shape_cast %3 : vector<16xf32> to vector<16x1xf32>
    %5 = vector.extract_strided_slice %1 {offsets = [0, 32], sizes = [16, 32], strides = [1, 1]} : vector<16x128xf32> to vector<16x32xf32>
    %cst_1 = arith.constant dense<0.000000e+00> : vector<16xf32>
    %6 = vector.multi_reduction <add>, %5, %cst_1 [1] : vector<16x32xf32> to vector<16xf32>
    %7 = vector.shape_cast %6 : vector<16xf32> to vector<16x1xf32>
    %8 = vector.extract_strided_slice %1 {offsets = [0, 64], sizes = [16, 32], strides = [1, 1]} : vector<16x128xf32> to vector<16x32xf32>
    %cst_2 = arith.constant dense<0.000000e+00> : vector<16xf32>
    %9 = vector.multi_reduction <add>, %8, %cst_2 [1] : vector<16x32xf32> to vector<16xf32>
    %10 = vector.shape_cast %9 : vector<16xf32> to vector<16x1xf32>
    %11 = vector.extract_strided_slice %1 {offsets = [0, 96], sizes = [16, 32], strides = [1, 1]} : vector<16x128xf32> to vector<16x32xf32>
    %cst_3 = arith.constant dense<0.000000e+00> : vector<16xf32>
    %12 = vector.multi_reduction <add>, %11, %cst_3 [1] : vector<16x32xf32> to vector<16xf32>
    %13 = vector.shape_cast %12 : vector<16xf32> to vector<16x1xf32>
    %14 = tpu.concatenate %4, %7, %10, %13 in 1 : vector<16x1xf32>, vector<16x1xf32>, vector<16x1xf32>, vector<16x1xf32> -> vector<16x4xf32>
    %cst_4 = arith.constant 5.000000e-01 : f32
    %15 = vector.broadcast %cst_4 : f32 to vector<16x4xf32>
    %16 = arith.mulf %15, %14 : vector<16x4xf32>
    %cst_5 = arith.constant -29.4060326 : f32
    %17 = vector.broadcast %cst_5 : f32 to vector<16x4xf32>
    %18 = arith.subf %17, %16 : vector<16x4xf32>
    %c0_6 = arith.constant 0 : index
    %c0_7 = arith.constant 0 : index
    %19 = vector.load %arg2[%c0_6, %c0_7] : memref<16x4xf32, #tpu.memory_space<vmem>>, vector<16x4xf32>
    tpu.vector_store %arg2[%c0_6, %c0_7], %18 {strides = array<i32>} : memref<16x4xf32, #tpu.memory_space<vmem>>, vector<16x4xf32>,
    return
  }
  func.func @transform_0(%arg0: i32) -> (i32, i32) {
    %c0_i32 = arith.constant 0 : i32
    %c0_i32_0 = arith.constant 0 : i32
    return %arg0, %c0_i32 : i32, i32
  }
  func.func @transform_1(%arg0: i32) -> (i32, i32) {
    %c0_i32 = arith.constant 0 : i32
    %c0_i32_0 = arith.constant 0 : i32
    return %arg0, %c0_i32 : i32, i32
  }
}

</mosaic_0001>

<bundles_post_ra>
// kernel: tpu_custom_call.1
= control target key start
LH: loop header
LB: loop body
LE: loop exit
PB: predicated region body
PF: predicated region fallthrough
CT: control target
= control target key end

     0   :  { %6 = vsyncpa [#allocation3], 0  ;;  %s120_s6 = smov [#allocation2]   ;;  %s153_s0 = inlined_call_operand.hbm [shape: f32[16,128], index: 0, kind: input, shape index: {}]   ;;  %s154_s1 = inlined_call_operand.vmem [shape: f32[16,4], index: 1, kind: output, shape index: {}]  }
   0x1   :  { %s12_s7 = sshll.u32 %s120_s6, 4  ;;  %s13_s7 = int_to_ptr.vmem [resolvable:$true] %s12_s7 }
   0x2   :  { %s106_s8 = scalar_lea.vmem %s13_s7, 256  ;;  %p111_p1 = scmp.lt.s32.totalorder %s13_s7, %s13_s7 }
   0x3   :  { %p107_p0 = scmp.ne.s32.totalorder %s13_s7, %s106_s8  ;;  %p112_p2 = scmp.lt.s32.totalorder %s106_s8, %s106_s8 }
   0x5   :  { %p113_p3 = por %p112_p2, %p111_p1 }
   0x7   :  { %p114_p4 = pnand %p113_p3, %p107_p0 }
   0x9   :  { %117 = shalt.err (!%p114_p4)
}
   0xa   :  { %s121_s9 = smov 128   ;;  %s122_s10 = smov 8  }
   0xb   :  { %18 = dma.hbm_to_vmem [thread:$0]  %s153_s0, 256, %s13_s7, [#allocation3], %s121_s9, %s121_s9, %s122_s10  }
   0xc   :  { %118 = dma.done.wait [#allocation3], 256  }
   0xd   :  { %119 = vsyncadd [#allocation3], 4294967040  ;;  %v22_v0 = vld [vmem:[#allocation2] sm:$0xff]  ;;  %v23_v1 = vld [vmem:[#allocation2 + $0x8] sm:$0xff]  ;;  %s123_s13 = smov 96   ;;  %s124_s14 = smov 64  }
   0xe   :  { %v24_v2 = vmul.f32 %v22_v0, %v22_v0  ;;  %v25_v3 = vmul.f32 %v23_v1, %v23_v1  ;;  %s125_s15 = smov 32   ;;  %vm26_vm0 = vcmask 261120   ;;  %vm71_vm1 = vcmask 7168  }
   0xf   :  { %vm74_vm2 = vcmask 15360   ;;  %vm77_vm3 = vcmask 23552   ;;  %vm84_vm4 = vcmask 31744  }
  0x10   :  { %35 = vrot.lane.b32.xlu0 %v24_v2, %s123_s13  ;;  %47 = vrot.lane.b32.xlu1 %v24_v2, %s124_s14  ;;  %v27_v4 = vsel %vm26_vm0, %v24_v2, 0.0  ;;  %v30_v5 = vsel %vm26_vm0, %v25_v3, 0.0 }
  0x14   :  { %37 = vrot.lane.b32.xlu0 %v25_v3, %s123_s13  ;;  %49 = vrot.lane.b32.xlu1 %v25_v3, %s124_s14 }
  0x18   :  { %59 = vrot.lane.b32.xlu0 %v24_v2, %s125_s15  ;;  %61 = vrot.lane.b32.xlu1 %v25_v3, %s125_s15 }
  0x37   :  { %28 = vadd.xlane.f32.xlu0 %v27_v4 }
  0x3c   :  { %31 = vadd.xlane.f32.xlu1 %v30_v5 }
  0x82   :  { %v36_v6 = vpop.permute.xlu0 %35  ;;  %v48_v7 = vpop.permute.xlu1 %47 }
  0x83   :  { %v41_v8 = vsel %vm26_vm0, %v36_v6, 0.0  ;;  %v53_v9 = vsel %vm26_vm0, %v48_v7, 0.0 }
  0x84   :  { %42 = vadd.xlane.f32.xlu0 %v41_v8  ;;  %54 = vadd.xlane.f32.xlu1 %v53_v9 }
  0x86   :  { %v38_v10 = vpop.permute.xlu0 %37  ;;  %v50_v11 = vpop.permute.xlu1 %49 }
  0x87   :  { %v44_v12 = vsel %vm26_vm0, %v38_v10, 0.0  ;;  %v56_v13 = vsel %vm26_vm0, %v50_v11, 0.0 }
  0x88   :  { %45 = vadd.xlane.f32.xlu0 %v44_v12 }
  0x8a   :  { %v60_v14 = vpop.permute.xlu0 %59  ;;  %v62_v15 = vpop.permute.xlu1 %61 }
  0x8b   :  { %v65_v16 = vsel %vm26_vm0, %v60_v14, 0.0  ;;  %v68_v17 = vsel %vm26_vm0, %v62_v15, 0.0 }
  0x8c   :  { %66 = vadd.xlane.f32.xlu1 %v65_v16  ;;  %57 = vadd.xlane.f32.xlu0 %v56_v13 }
  0x90   :  { %69 = vadd.xlane.f32.xlu0 %v68_v17 }
  0xc0   :  { %v29_v18 = vpop.xlane.xlu0 %28 }
  0xc5   :  { %v32_v19 = vpop.xlane.xlu1 %31 }
 0x10d   :  { %v43_v20 = vpop.xlane.xlu0 %42  ;;  %v55_v21 = vpop.xlane.xlu1 %54 }
 0x10e   :  { %v72_v23 = vsel %vm71_vm1, %v29_v18, %v43_v20 }
 0x10f   :  { %v75_v24 = vsel %vm74_vm2, %v72_v23, %v55_v21 }
 0x111   :  { %v46_v22 = vpop.xlane.xlu0 %45 }
 0x112   :  { %v73_v29 = vsel %vm71_vm1, %v32_v19, %v46_v22 }
 0x115   :  { %v67_v25 = vpop.xlane.xlu1 %66  ;;  %v58_v26 = vpop.xlane.xlu0 %57 }
 0x116   :  { %v78_v27 = vsel %vm77_vm3, %v75_v24, %v67_v25  ;;  %v76_v31 = vsel %vm74_vm2, %v73_v29, %v58_v26 }
 0x117   :  { %v80_v28 = vmul.f32 0.5, %v78_v27 }
 0x119   :  { %v82_v30 = vsub.f32 -29.406033, %v80_v28  ;;  %v70_v32 = vpop.xlane.xlu0 %69 }
 0x11a   :  { %v79_v33 = vsel %vm77_vm3, %v76_v31, %v70_v32 }
 0x11b   :  { %85 = vst.msk [vmem:[%s154_s1] sm:$0xff] %vm84_vm4, %v82_v30  ;;  %v81_v34 = vmul.f32 0.5, %v79_v33 }
 0x11d   :  { %v83_v35 = vsub.f32 -29.406033, %v81_v34 }
 0x11f   :  { %86 = vst.msk [vmem:[%s154_s1 + $0x8] sm:$0xff] %vm84_vm4, %v83_v35 }
 0x120   :  { %91 = vsyncpa [#allocation3], 1 }

</bundles_post_ra>
